<compile_context>
chip_gen: v7x
topology: tpu7x:2x2x1
jax: 0.10.0
libtpu: 0.0.40
codegen_flags: <defaults>
</compile_context>

<pallas_src>
import jax
import jax.numpy as jnp
from jax.experimental import pallas as pl
from jax.experimental.pallas import tpu as pltpu


def _attention_kernel(x_ref, w1_ref, b1_ref, w2_ref, b2_ref, o_ref):
    # x_ref: (1, C, TILE_P) tile -- channels on sublanes, pixels on lanes.
    x = x_ref[0].astype(jnp.float32)                                   # (C, TILE_P)

    # conv1 (1x1) == channel matmul, bias broadcast along lanes, ReLU
    h = jnp.dot(w1_ref[...], x, preferred_element_type=jnp.float32)    # (C_mid, TILE_P)
    h = jnp.maximum(h + b1_ref[...], 0.0)

    # conv2 (1x1) == channel matmul, bias, Sigmoid.
    z = jnp.dot(w2_ref[...], h, preferred_element_type=jnp.float32)    # (C, TILE_P)
    z = z + b2_ref[...]
    # sigmoid = 1 / (1 + exp(-z)): exp on EUP, approx reciprocal on EUP (free slot).
    a = pl.reciprocal(1.0 + jnp.exp(-z), approx=True)

    # gate the input with the attention weights (lane-dense store).
    o_ref[0] = (x * a).astype(o_ref.dtype)


def attention_module_pallas(x_nchw, w1, b1, w2, b2, *, target_tile_pixels=8192):
    """x_nchw: [B, C, H, W] (PyTorch layout), any float dtype (f32 / bf16 I/O supported;
    math is done in f32 inside the kernel).
    w1: [C_mid, C], b1: [C_mid]   (Conv2d(C, C//8, 1) weight squeezed)
    w2: [C, C_mid], b2: [C]       (Conv2d(C//8, C, 1) weight squeezed)
    Returns [B, C, H, W]."""
    B, C, H, W = x_nchw.shape
    C_mid = w1.shape[0]
    P = H * W

    # Free reshape: NCHW is already (B, C, H*W) contiguous -- no transpose passes.
    x3 = x_nchw.reshape(B, C, P)

    # Pick a lane-dense pixel tile: full P if small, otherwise a big multiple of 128.
    # (~8192 px * 32 ch * 4 B = 1 MiB in + 1 MiB out per step; double-buffered this is
    #  ~4 MiB of VMEM -> fits v5e's 16 MiB scoped default and v7x's 64 MiB physical.)
    if P <= target_tile_pixels:
        tile_p = P                                 # equals full dim -> always legal
    else:
        tile_p = max(128, (target_tile_pixels // 128) * 128)
    grid = (B, pl.cdiv(P, tile_p))                 # ragged tail handled by Pallas masking

    # Weights already in "matmul-ready" orientation: y1 = W1 @ x, y2 = W2 @ h.
    w1f = w1.astype(jnp.float32)                   # (C_mid, C)
    w2f = w2.astype(jnp.float32)                   # (C, C_mid)
    b1c = b1.astype(jnp.float32).reshape(C_mid, 1)
    b2c = b2.astype(jnp.float32).reshape(C, 1)

    out3 = pl.pallas_call(
        _attention_kernel,
        out_shape=jax.ShapeDtypeStruct((B, C, P), x_nchw.dtype),
        grid_spec=pltpu.PrefetchScalarGridSpec(
            num_scalar_prefetch=0,
            grid=grid,
            in_specs=[
                pl.BlockSpec((1, C, tile_p), lambda b, p: (b, 0, p)),   # x tile
                pl.BlockSpec((C_mid, C), lambda b, p: (0, 0)),          # W1
                pl.BlockSpec((C_mid, 1), lambda b, p: (0, 0)),          # b1
                pl.BlockSpec((C, C_mid), lambda b, p: (0, 0)),          # W2
                pl.BlockSpec((C, 1), lambda b, p: (0, 0)),              # b2
            ],
            out_specs=pl.BlockSpec((1, C, tile_p), lambda b, p: (b, 0, p)),
        ),
        compiler_params=pltpu.CompilerParams(
            dimension_semantics=("parallel", "parallel"),
        ),
    )(x3, w1f, b1c, w2f, b2c)

    return out3.reshape(B, C, H, W)


def attention_module_ref(x_nchw, w1, b1, w2, b2):
    """Pure-JAX reference mirroring the PyTorch forward (NCHW throughout)."""
    B, C, H, W = x_nchw.shape
    xf = x_nchw.reshape(B, C, H * W).astype(jnp.float32)
    h = jnp.maximum(jnp.einsum("mc,bcp->bmp", w1, xf) + b1[None, :, None], 0.0)
    a = jax.nn.sigmoid(jnp.einsum("cm,bmp->bcp", w2, h) + b2[None, :, None])
    return (xf * a).reshape(B, C, H, W).astype(x_nchw.dtype)


if __name__ == "__main__":
    key = jax.random.PRNGKey(0)
    B, C, H, W = 2, 32, 16, 16            # in_channels=32 -> mid channels = 32 // 8 = 4
    C_mid = C // 8

    k_x, k_w1, k_b1, k_w2, k_b2 = jax.random.split(key, 5)
    x = jax.random.normal(k_x, (B, C, H, W), dtype=jnp.float32)

    # Conv2d(.., kernel_size=1) weights squeezed to 2D.
    w1 = jax.random.normal(k_w1, (C_mid, C), dtype=jnp.float32) * 0.1
    b1 = jax.random.normal(k_b1, (C_mid,), dtype=jnp.float32) * 0.1
    w2 = jax.random.normal(k_w2, (C, C_mid), dtype=jnp.float32) * 0.1
    b2 = jax.random.normal(k_b2, (C,), dtype=jnp.float32) * 0.1

    out = attention_module_pallas(x, w1, b1, w2, b2)
    out = jax.block_until_ready(out)

    ref = attention_module_ref(x, w1, b1, w2, b2)
    assert out.shape == (B, C, H, W)
    # Slightly loose tolerance because the sigmoid uses the EUP approx reciprocal.
    assert jnp.allclose(out, ref, atol=5e-3, rtol=5e-3), float(jnp.max(jnp.abs(out - ref)))

    print("KERNEL_OK")
</pallas_src>

<mosaic_0001>
module attributes {stable_mosaic.version = 11 : i64} {
  func.func @_attention_kernel(%arg0: i32, %arg1: i32, %arg2: memref<1x32x256xf32, #tpu.memory_space<vmem>>, %arg3: memref<4x32xf32, #tpu.memory_space<vmem>>, %arg4: memref<4x1xf32, #tpu.memory_space<vmem>>, %arg5: memref<32x4xf32, #tpu.memory_space<vmem>>, %arg6: memref<32x1xf32, #tpu.memory_space<vmem>>, %arg7: memref<1x32x256xf32, #tpu.memory_space<vmem>>) attributes {dimension_semantics = [#tpu.dimension_semantics<parallel>, #tpu.dimension_semantics<parallel>], iteration_bounds = array<i64: 2, 1>, scalar_prefetch = 0 : i64, scratch_operands = 0 : i64, tpu.core_type = #tpu.core_type<tc>, window_params = [{transform_indices = @transform_0, window_bounds = array<i64: 1, 32, 256>}, {pipeline_mode = #tpu.pipeline_mode<synchronous>, transform_indices = @transform_1, window_bounds = array<i64: 4, 32>}, {pipeline_mode = #tpu.pipeline_mode<synchronous>, transform_indices = @transform_2, window_bounds = array<i64: 4, 1>}, {pipeline_mode = #tpu.pipeline_mode<synchronous>, transform_indices = @transform_3, window_bounds = array<i64: 32, 4>}, {pipeline_mode = #tpu.pipeline_mode<synchronous>, transform_indices = @transform_4, window_bounds = array<i64: 32, 1>}, {transform_indices = @transform_5, window_bounds = array<i64: 1, 32, 256>}]} {
    %c0 = arith.constant 0 : index
    %c0_0 = arith.constant 0 : index
    %c0_1 = arith.constant 0 : index
    %0 = vector.load %arg2[%c0, %c0_0, %c0_1] : memref<1x32x256xf32, #tpu.memory_space<vmem>>, vector<1x32x256xf32>
    %1 = vector.shape_cast %0 : vector<1x32x256xf32> to vector<32x256xf32>
    %c0_2 = arith.constant 0 : index
    %c0_3 = arith.constant 0 : index
    %2 = vector.load %arg3[%c0_2, %c0_3] : memref<4x32xf32, #tpu.memory_space<vmem>>, vector<4x32xf32>
    %cst = arith.constant dense<0.000000e+00> : vector<4x256xf32>
    %3 = tpu.matmul %2, %1, %cst {dimension_numbers = #tpu.dot_dimension_numbers<[1], [0], [0], [1], [0, 0, 1, 1], [], []>} : vector<4x32xf32>, vector<32x256xf32>, vector<4x256xf32> -> vector<4x256xf32>
    %c0_4 = arith.constant 0 : index
    %c0_5 = arith.constant 0 : index
    %4 = vector.load %arg4[%c0_4, %c0_5] : memref<4x1xf32, #tpu.memory_space<vmem>>, vector<4x1xf32>
    %5 = vector.broadcast %4 : vector<4x1xf32> to vector<4x256xf32>
    %6 = arith.addf %3, %5 : vector<4x256xf32>
    %cst_6 = arith.constant 0.000000e+00 : f32
    %7 = vector.broadcast %cst_6 : f32 to vector<4x256xf32>
    %8 = arith.maximumf %6, %7 : vector<4x256xf32>
    %c0_7 = arith.constant 0 : index
    %c0_8 = arith.constant 0 : index
    %9 = vector.load %arg5[%c0_7, %c0_8] : memref<32x4xf32, #tpu.memory_space<vmem>>, vector<32x4xf32>
    %cst_9 = arith.constant dense<0.000000e+00> : vector<32x256xf32>
    %10 = tpu.matmul %9, %8, %cst_9 {dimension_numbers = #tpu.dot_dimension_numbers<[1], [0], [0], [1], [0, 0, 1, 1], [], []>} : vector<32x4xf32>, vector<4x256xf32>, vector<32x256xf32> -> vector<32x256xf32>
    %c0_10 = arith.constant 0 : index
    %c0_11 = arith.constant 0 : index
    %11 = vector.load %arg6[%c0_10, %c0_11] : memref<32x1xf32, #tpu.memory_space<vmem>>, vector<32x1xf32>
    %12 = vector.broadcast %11 : vector<32x1xf32> to vector<32x256xf32>
    %13 = arith.addf %10, %12 : vector<32x256xf32>
    %cst_12 = arith.constant 0.000000e+00 : f32
    %14 = vector.broadcast %cst_12 : f32 to vector<32x256xf32>
    %15 = arith.subf %14, %13 : vector<32x256xf32>
    %16 = math.exp %15 : vector<32x256xf32>
    %cst_13 = arith.constant 1.000000e+00 : f32
    %17 = vector.broadcast %cst_13 : f32 to vector<32x256xf32>
    %18 = arith.addf %17, %16 : vector<32x256xf32>
    %19 = tpu.reciprocal %18 {approx = true} : vector<32x256xf32> -> vector<32x256xf32>
    %20 = arith.mulf %1, %19 : vector<32x256xf32>
    %c0_14 = arith.constant 0 : index
    %c0_15 = arith.constant 0 : index
    %c0_16 = arith.constant 0 : index
    %21 = vector.load %arg7[%c0_14, %c0_15, %c0_16] : memref<1x32x256xf32, #tpu.memory_space<vmem>>, vector<1x32x256xf32>
    %22 = vector.shape_cast %21 : vector<1x32x256xf32> to vector<32x256xf32>
    %23 = vector.shape_cast %20 : vector<32x256xf32> to vector<1x32x256xf32>
    tpu.vector_store %arg7[%c0_14, %c0_15, %c0_16], %23 {strides = array<i32>} : memref<1x32x256xf32, #tpu.memory_space<vmem>>, vector<1x32x256xf32>,
    return
  }
  func.func @transform_0(%arg0: i32, %arg1: i32) -> (i32, i32, i32) {
    %c0_i32 = arith.constant 0 : i32
    %c0_i32_0 = arith.constant 0 : i32
    return %arg0, %c0_i32, %arg1 : i32, i32, i32
  }
  func.func @transform_1(%arg0: i32, %arg1: i32) -> (i32, i32) {
    %c0_i32 = arith.constant 0 : i32
    %c0_i32_0 = arith.constant 0 : i32
    %c0_i32_1 = arith.constant 0 : i32
    return %c0_i32, %c0_i32_0 : i32, i32
  }
  func.func @transform_2(%arg0: i32, %arg1: i32) -> (i32, i32) {
    %c0_i32 = arith.constant 0 : i32
    %c0_i32_0 = arith.constant 0 : i32
    %c0_i32_1 = arith.constant 0 : i32
    return %c0_i32, %c0_i32_0 : i32, i32
  }
  func.func @transform_3(%arg0: i32, %arg1: i32) -> (i32, i32) {
    %c0_i32 = arith.constant 0 : i32
    %c0_i32_0 = arith.constant 0 : i32
    %c0_i32_1 = arith.constant 0 : i32
    return %c0_i32, %c0_i32_0 : i32, i32
  }
  func.func @transform_4(%arg0: i32, %arg1: i32) -> (i32, i32) {
    %c0_i32 = arith.constant 0 : i32
    %c0_i32_0 = arith.constant 0 : i32
    %c0_i32_1 = arith.constant 0 : i32
    return %c0_i32, %c0_i32_0 : i32, i32
  }
  func.func @transform_5(%arg0: i32, %arg1: i32) -> (i32, i32, i32) {
    %c0_i32 = arith.constant 0 : i32
    %c0_i32_0 = arith.constant 0 : i32
    return %arg0, %c0_i32, %arg1 : i32, i32, i32
  }
}

</mosaic_0001>

<bundles_post_ra>
// kernel: tpu_custom_call.1
= control target key start
LH: loop header
LB: loop body
LE: loop exit
PB: predicated region body
PF: predicated region fallthrough
CT: control target
= control target key end

     0   :  { %10 = vsyncpa [#allocation3], 0  ;;  %s1178_s0 = inlined_call_operand.hbm [shape: f32[2,32,256], index: 0, kind: input, shape index: {}]   ;;  %s1179_s1 = inlined_call_operand.vmem [shape: f32[4,32], index: 1, kind: input, shape index: {}]   ;;  %s1180_s2 = inlined_call_operand.vmem [shape: f32[4,1], index: 2, kind: input, shape index: {}]   ;;  %s1181_s3 = inlined_call_operand.vmem [shape: f32[32,4], index: 3, kind: input, shape index: {}]   ;;  %s1182_s4 = inlined_call_operand.vmem [shape: f32[32,1], index: 4, kind: input, shape index: {}]   ;;  %s1183_s5 = inlined_call_operand.hbm [shape: f32[2,32,256], index: 5, kind: output, shape index: {}]  }
   0x1   :  { %12 = vsyncpa [#allocation3 + $0x1], 0 }
   0x2   :  { %13 = vsyncpa [#allocation4], 0 }
   0x3   :  { %15 = vsyncpa [#allocation4 + $0x1], 0  ;;  %s937_s18 = smov 0   ;;  %s939_s19 = smov 0  }
   0x4   :  { %s941_s20 = smov 0   ;;  %s943_s21 = smov 0  }
   0x5   :  { %s945_s22 = smov 0   ;;  %s947_s23 = smov 0  }
   0x6 LB: > { %s651_s24 = sadd.s32 4294967295, %s897_s23   ;;  %s652_s25 = sadd.s32 4294967294, %s897_s23   ;;  %s897_s23 = sphi %s947_s23, %s21_s23   ;;  %s893_s22 = sphi %s945_s22, %s1198_s22   ;;  %s889_s21 = sphi %s943_s21, %s1197_s21   ;;  %s885_s20 = sphi %s941_s20, %s1196_s20   ;;  %s881_s19 = sphi %s939_s19, %s1195_s19   ;;  %s877_s18 = sphi %s937_s18, %s1194_s18  }
   0x7   : > { %s33_s26 = sadd.s32 1, %s893_s22  ;;  %s42_s27 = sadd.s32 1, %s885_s20 }
   0x8   : > { %p35_p0 = scmp.ge.s32.totalorder %s33_s26, 2  ;;  %p49_p1 = scmp.ne.s32.totalorder %s885_s20, %s881_s19 }
   0x9   : > { %p50_p2 = scmp.eq.s32.totalorder %s897_s23, 0  ;;  %p55_p3 = scmp.ne.s32.totalorder %s881_s19, %s877_s18 }
   0xa   : > { %s1200_s26 = smov (%p35_p0, %s33_s26), 0  ;;  %p56_p5 = scmp.eq.s32.totalorder %s651_s24, 0 }
   0xb   : > { %p978_p4 = por %p50_p2, %p49_p1  ;;  %s37_s29 = ssub.s32 %s893_s22, %s1200_s26 }
   0xc   : > { %p165_p6 = scmp.eq.s32.totalorder %s651_s24, 1  ;;  %p40_p7 = scmp.eq.s32.totalorder %s37_s29, 0 }
   0xd   : > { %p984_p8 = por %p56_p5, %p55_p3  ;;  %p171_p10 = scmp.eq.s32.totalorder %s652_s25, 1 }
   0xe   : > { %p988_p9 = por %p165_p6, %p49_p1  ;;  %p695_p13 = scmp.lt.s32.totalorder %s897_s23, 2 }
   0xf   : > { %s993_s7 = scalar_select %p40_p7, %s885_s20, %s42_s27  }
  0x10   : > { %s1187_s6 = scalar_select %p988_p9, 1, 0 }
  0x11   : > { %p995_p11 = por %p171_p10, %p55_p3  ;;  %s203_s9 = sand.u32 1, %s885_s20  }
  0x12   : > { %s655_s10 = sshll.u32 %s203_s9, 6  ;;  %s673_s11 = sshll.u32 %s893_s22, 10 }
  0x13   : > { %s1188_s8 = scalar_select %p995_p11, 1, 0 }
  0x14   : > { %s1006_s14 = scalar_lea.hbm %s1178_s0, %s673_s11  ;;  %s207_s15 = scalar_lea.vmem [#allocation2], %s655_s10 }
  0x15   : > { %s216_s16 = sshll.u32 %s207_s15, 4  ;;  %p1012_p0 = pnand %p695_p13, %p978_p4  ;;  %s1008_s16 = int_to_ptr.vmem [resolvable:$true] %s216_s16 }
  0x16   : > { %s1017_s24 = scalar_lea.sflag [#allocation3], %s203_s9  ;;  %s785_s25 = scalar_lea.hbm %s1006_s14, 1024 }
  0x17   : > { %p786_p2 = scmp.ne.s32.totalorder %s1006_s14, %s785_s25  ;;  %p787_p3 = pneg %p1012_p0 }
  0x18   : > { %s790_s28 = scalar_lea.hbm %s1178_s0, 2048  ;;  %p791_p4 = scmp.lt.u32.totalorder %s1006_s14, %s1178_s0 }
  0x19   : > { %p788_p5 = pnand %p787_p3, %p786_p2  ;;  %p792_p7 = scmp.lt.u32.totalorder %s790_s28, %s785_s25 }
  0x1a   : > { %p794_p13 = scmp.lt.u32.totalorder %s785_s25, %s1006_s14 }
  0x1b   : > { %p789_p6 = pneg %p788_p5  ;;  %p793_p10 = por %p792_p7, %p791_p4 }
  0x1d   : > { %p795_p12 = por %p794_p13, %p793_p10 }
  0x1f   : > { %p796_p1 = pnand %p795_p12, %p789_p6 }
  0x21   : > { %799 = shalt.err (!%p796_p1)
}
  0x22   : > { %s800_s9 = scalar_lea.vmem %s1008_s16, 1024  ;;  %s899_s12 = smov [#allocation2]  }
  0x23   : > { %p801_p2 = scmp.ne.s32.totalorder %s1008_s16, %s800_s9  ;;  %s805_s13 = sshll.u32 %s899_s12, 4  ;;  %s806_s13 = int_to_ptr.vmem [resolvable:$false] %s805_s13 }
  0x24   : > { %s807_s15 = scalar_lea.vmem %s806_s13, 2048  ;;  %p808_p9 = scmp.lt.s32.totalorder %s1008_s16, %s806_s13 }
  0x25   : > { %p803_p5 = pnand %p801_p2, %p787_p3  ;;  %p809_p4 = scmp.lt.s32.totalorder %s807_s15, %s800_s9 }
  0x27   : > { %p804_p11 = pneg %p803_p5  ;;  %p810_p7 = por %p809_p4, %p808_p9 }
  0x29   : > { %p811_p10 = pnand %p810_p7, %p804_p11 }
  0x2b   : > { %814 = shalt.err (!%p811_p10)
}
  0x2c   : > { %s900_s25 = smov 256   ;;  %s901_s27 = smov 16  }
  0x2d   : > { %690 = dma.hbm_to_vmem [thread:$0]  (!%p1012_p0), %s1006_s14, 1024, %s1008_s16, %s1017_s24, %s900_s25, %s900_s25, %s901_s27  }
  0x2e   : > { %p224_p12 = scmp.lt.s32.totalorder %s897_s23, 3  ;;  %p1190_p1 = scmp.ge.s32.totalorder %s897_s23, 1 }
  0x30   : > { %p225_p3 = pnand %p1190_p1, %p224_p12 }
  0x31   : > { %s1049_s29 = sand.u32 (!%p225_p3), 1, %s881_s19  }
  0x32   : > { %228 = sbr.rel (%p225_p3) target bundleno = 562 (0x232), region = 40  ;;  %s659_s28 = sshll.u32 (!%p225_p3), %s1049_s29, 6 }
  0x33   : > { %s231_s10 = scalar_lea.sflag (!%p225_p3), [#allocation3], %s1049_s29  ;;  %s234_s11 = scalar_lea.vmem (!%p225_p3), [#allocation2], %s659_s28 }
  0x39   : > { %868 = dma.done.wait (%p984_p8), %s231_s10, 1024  }
  0x3a   : > { %870 = vsyncadd (%p984_p8), %s231_s10, 4294966272  ;;  %v902_v0 = vmov 0.0   ;;  %v903_v1 = vmov 0   ;;  %v1059_v2 = vld [vmem:[%s234_s11 + $0x8] sm:$0xff]  ;;  %v1061_v3 = vld [vmem:[%s234_s11 + $0x18] sm:$0xff]  ;;  %vm278_vm0 = vcmask 261120  }
  0x3b   : > { %346 = vmatprep.mubr.f32.mxu0 %v902_v0  ;;  %751 = vset.pattern.permute.xlu0 %v903_v1  ;;  %v1063_v4 = vld [vmem:[%s234_s11] sm:$0xff]  ;;  %v675_v5 = vpack.c.bf16 %v1061_v3, %v1059_v2  ;;  %v1067_v6 = vld [vmem:[%s234_s11 + $0x10] sm:$0xff]  ;;  %v1069_v7 = vld [vmem:[%s234_s11 + $0x28] sm:$0xff]  ;;  %vm396_vm1 = vcmask 1043456   ;;  %vm383_vm2 = vcmask 31744   ;;  %s260_s13 = scalar_lea.vmem [#allocation5], %s659_s28 }
  0x3c   : > { %467 = vmatprep.mubr.f32.mxu1 %v902_v0  ;;  %752 = vset.pattern.permute.xlu1 %v903_v1  ;;  %v1071_v8 = vld [vmem:[%s234_s11 + $0x38] sm:$0xff]  ;;  %v677_v9 = vpack.c.bf16 %v1067_v6, %v1063_v4  ;;  %v1077_v11 = vld [vmem:[%s234_s11 + $0x20] sm:$0xff]  ;;  %v1079_v12 = vld [vmem:[%s234_s11 + $0x30] sm:$0xff]  ;;  %s674_s28 = sshll.u32 %s889_s21, 10  ;;  %s564_s15 = sshll.u32 %s260_s13, 4  ;;  %s1128_s15 = int_to_ptr.vmem [resolvable:$true] %s564_s15 }
  0x3d   : > { %v679_v10 = vpack.c.bf16 %v1071_v8, %v1069_v7  ;;  %676 = vmatprep.subr.bf16.mxu0 %v675_v5  ;;  %v272_v13 = vld [vmem:[%s1180_s2] sm:$0xf]  ;;  %v681_v14 = vpack.c.bf16 %v1079_v12, %v1077_v11  ;;  %v362_v17 = vld [vmem:[%s1182_s4 + $0x18] sm:$0xff]  ;;  %v360_v18 = vld [vmem:[%s1182_s4 + $0x8] sm:$0xff]  ;;  %s1126_s10 = scalar_lea.hbm %s1183_s5, %s674_s28  ;;  %s549_s11 = scalar_lea.sflag [#allocation4], %s1049_s29 }
  0x3e   : > { %678 = vmatpush1.bf16.msra.mxu0 %v677_v9  ;;  %275 = vperm.xlu0 %751, %v272_v13   ;;  %v359_v15 = vld [vmem:[%s1182_s4] sm:$0xff]  ;;  %v361_v19 = vld [vmem:[%s1182_s4 + $0x10] sm:$0xff]  ;;  %v356_v28 = vld [vmem:[%s1181_s3 + $0x8] sm:$0xff]  ;;  %s815_s21 = scalar_lea.vmem %s1128_s15, 1024  ;;  %p1191_p9 = scmp.ne.s32.totalorder %s1187_s6, 0 }
  0x3f   : > { %680 = vmatprep.subr.bf16.mxu0 %v679_v10  ;;  %v271_v16 = vld [vmem:[%s1179_s1] sm:$0xf]  ;;  %370 = vperm.xlu1 %752, %v360_v18   ;;  %v357_v29 = vld [vmem:[%s1181_s3 + $0x10] sm:$0xff]  ;;  %v358_v30 = vld [vmem:[%s1181_s3 + $0x18] sm:$0xff]  ;;  %p816_p8 = scmp.ne.s32.totalorder %s1128_s15, %s815_s21  ;;  %s904_s30 = smov [#allocation5]  }
  0x40   : > { %v355_v27 = vld [vmem:[%s1181_s3] sm:$0xff]  ;;  %s819_s14 = sshll.u32 %s904_s30, 4  ;;  %s820_s14 = int_to_ptr.vmem [resolvable:$false] %s819_s14 }
  0x41   : > { %p817_p11 = pnand %p816_p8, %p1191_p9  ;;  %s821_s16 = scalar_lea.vmem %s820_s14, 2048 }
  0x42   : > { %682 = vmatpush1.bf16.msra.mxu0 %v681_v14  ;;  %365 = vperm.xlu0 %751, %v359_v15   ;;  %p822_p6 = scmp.lt.s32.totalorder %s1128_s15, %s820_s14  ;;  %p823_p13 = scmp.lt.s32.totalorder %s821_s16, %s815_s21 }
  0x43   : > { %375 = vperm.xlu1 %752, %v361_v19   ;;  %p818_p0 = pneg %p817_p11 }
  0x44   : > { %p824_p2 = por %p823_p13, %p822_p6 }
  0x45   : > { %661 = vmatmul.mubr.msk.f32.vlgmr.msra.gmra.mrb[0].mxu0 %vm278_vm0, %v271_v16 }
  0x46   : > { %380 = vperm.xlu0 %751, %v362_v17   ;;  %p825_p5 = pnand %p824_p2, %p818_p0 }
  0xbd   : > { %v276_v20 = vpop.permute.xlu0 %275 }
  0xbe   : > { %v371_v33 = vpop.permute.xlu1 %370 }
  0xc1   : > { %v366_v31 = vpop.permute.xlu0 %365 }
  0xc2   : > { %v376_v45 = vpop.permute.xlu1 %375 }
  0xc5   : > { %v381_v55 = vpop.permute.xlu0 %380 }
 0x118   : > { %v348_v21 = vpop.f32.mrb[0].mxu0 }
 0x119   : > { %v349_v22 = vadd.f32 %v348_v21, %v276_v20  ;;  %v350_v23 = vpop.f32.mrb[1].mxu0 }
 0x11a   : > { %v351_v24 = vadd.f32 %v350_v23, %v276_v20 }
 0x11b   : > { %v353_v26 = vmax.f32 %v349_v22, 0.0 }
 0x11c   : > { %v354_v25 = vmax.f32 %v351_v24, 0.0 }
 0x11e   : > { %662 = vmatprep.subr.msk.mxu1 %vm396_vm1, %v354_v25 }
 0x11f   : > { %663 = vmatpush1.msk.msra.mxu1 %vm396_vm1, %v353_v26 }
 0x120   : > { %664 = vmatmul.mubr.msk.f32.vlgmr.msra.gmra.mrb[0].mxu1 %vm383_vm2, %v355_v27 }
 0x121   : > { %473 = vmatprep.mubr.f32.mxu1 %v902_v0 }
 0x124   : > { %665 = vmatmul.mubr.msk.f32.gmra.mrb[2].mxu1 %vm383_vm2, %v356_v28 }
 0x125   : > { %479 = vmatprep.mubr.f32.mxu1 %v902_v0 }
 0x128   : > { %666 = vmatmul.mubr.msk.f32.gmra.mrb[4].mxu1 %vm383_vm2, %v357_v29 }
 0x129   : > { %485 = vmatprep.mubr.f32.mxu1 %v902_v0 }
 0x12c   : > { %667 = vmatmul.mubr.msk.f32.gmra.mrb[6].mxu1 %vm383_vm2, %v358_v30 }
 0x1f3   : > { %v469_v32 = vpop.f32.mrb[0].mxu1 }
 0x1f4   : > { %v470_v34 = vadd.f32 %v469_v32, %v366_v31  ;;  %v471_v35 = vpop.f32.mrb[1].mxu1 }
 0x1f5   : > { %v472_v36 = vadd.f32 %v471_v35, %v366_v31 }
 0x1f6   : > { %v492_v37 = vsub.f32 0.0, %v470_v34 }
 0x1f7   : > { %v493_v38 = vsub.f32 0.0, %v472_v36  ;;  %v475_v39 = vpop.f32.mrb[2].mxu1 }
 0x1f8   : > { %v500_v40 = vmul.f32 1.442695, %v492_v37  ;;  %v476_v41 = vadd.f32 %v475_v39, %v371_v33  ;;  %v477_v42 = vpop.f32.mrb[3].mxu1 }
 0x1f9   : > { %v502_v43 = vmul.f32 1.442695, %v493_v38  ;;  %v478_v44 = vadd.f32 %v477_v42, %v371_v33 }
 0x1fa   : > { %753 = vpow2.f32 %v500_v40  ;;  %v494_v46 = vsub.f32 0.0, %v476_v41 }
 0x1fb   : > { %755 = vpow2.f32 %v502_v43  ;;  %v495_v47 = vsub.f32 0.0, %v478_v44  ;;  %v481_v48 = vpop.f32.mrb[4].mxu1 }
 0x1fc   : > { %v504_v49 = vmul.f32 1.442695, %v494_v46  ;;  %v482_v50 = vadd.f32 %v481_v48, %v376_v45  ;;  %v483_v51 = vpop.f32.mrb[5].mxu1 }
 0x1fd   : > { %v506_v52 = vmul.f32 1.442695, %v495_v47  ;;  %v484_v53 = vadd.f32 %v483_v51, %v376_v45 }
 0x1fe   : > { %757 = vpow2.f32 %v504_v49  ;;  %v496_v54 = vsub.f32 0.0, %v482_v50 }
 0x1ff   : > { %759 = vpow2.f32 %v506_v52  ;;  %v497_v56 = vsub.f32 0.0, %v484_v53  ;;  %v487_v57 = vpop.f32.mrb[6].mxu1 }
 0x200   : > { %v508_v58 = vmul.f32 1.442695, %v496_v54  ;;  %v488_v59 = vadd.f32 %v487_v57, %v381_v55  ;;  %v489_v60 = vpop.f32.mrb[7].mxu1 }
 0x201   : > { %v510_v61 = vmul.f32 1.442695, %v497_v56  ;;  %v490_v62 = vadd.f32 %v489_v60, %v381_v55 }
 0x202   : > { %761 = vpow2.f32 %v508_v58  ;;  %v498_v63 = vsub.f32 0.0, %v488_v59 }
 0x203   : > { %763 = vpow2.f32 %v510_v61  ;;  %v499_v0 = vsub.f32 0.0, %v490_v62 }
 0x204   : > { %v754_v1 = vpop.eup %753  ;;  %v512_v5 = vmul.f32 1.442695, %v498_v63 }
 0x205   : > { %v756_v9 = vpop.eup %755  ;;  %v516_v10 = vadd.f32 1.0, %v754_v1  ;;  %v514_v13 = vmul.f32 1.442695, %v499_v0 }
 0x206   : > { %v517_v14 = vadd.f32 1.0, %v756_v9  ;;  %765 = vpow2.f32 %v512_v5 }
 0x207   : > { %767 = vrcp.f32 %v516_v10 }
 0x208   : > { %v758_v15 = vpop.eup %757  ;;  %769 = vrcp.f32 %v517_v14 }
 0x209   : > { %v760_v16 = vpop.eup %759  ;;  %v518_v17 = vadd.f32 1.0, %v758_v15  ;;  %771 = vpow2.f32 %v514_v13 }
 0x20a   : > { %v519_v18 = vadd.f32 1.0, %v760_v16 }
 0x20b   : > { %773 = vrcp.f32 %v518_v17 }
 0x20c   : > { %v762_v19 = vpop.eup %761  ;;  %775 = vrcp.f32 %v519_v18 }
 0x20d   : > { %v764_v20 = vpop.eup %763  ;;  %v520_v21 = vadd.f32 1.0, %v762_v19 }
 0x20e   : > { %v521_v22 = vadd.f32 1.0, %v764_v20 }
 0x20f   : > { %777 = vrcp.f32 %v520_v21 }
 0x210   : > { %v766_v23 = vpop.eup %765  ;;  %779 = vrcp.f32 %v521_v22 }
 0x211   : > { %v768_v24 = vpop.eup %767  ;;  %v522_v25 = vadd.f32 1.0, %v766_v23 }
 0x212   : > { %v770_v26 = vpop.eup %769  ;;  %v532_v27 = vmul.f32 %v768_v24, %v1063_v4 }
 0x213   : > { %v772_v28 = vpop.eup %771  ;;  %v533_v29 = vmul.f32 %v770_v26, %v1059_v2  ;;  %781 = vrcp.f32 %v522_v25 }
 0x214   : > { %540 = vst [vmem:[%s260_s13] sm:$0xff] %v532_v27  ;;  %v523_v30 = vadd.f32 1.0, %v772_v28 }
 0x215   : > { %v774_v31 = vpop.eup %773  ;;  %541 = vst [vmem:[%s260_s13 + $0x8] sm:$0xff] %v533_v29 }
 0x216   : > { %v776_v32 = vpop.eup %775  ;;  %v534_v33 = vmul.f32 %v774_v31, %v1067_v6  ;;  %783 = vrcp.f32 %v523_v30 }
 0x217   : > { %v535_v34 = vmul.f32 %v776_v32, %v1061_v3 }
 0x218   : > { %542 = vst [vmem:[%s260_s13 + $0x10] sm:$0xff] %v534_v33 }
 0x219   : > { %v778_v35 = vpop.eup %777  ;;  %543 = vst [vmem:[%s260_s13 + $0x18] sm:$0xff] %v535_v34 }
 0x21a   : > { %v780_v4 = vpop.eup %779  ;;  %v536_v2 = vmul.f32 %v778_v35, %v1077_v11 }
 0x21b   : > { %v537_v36 = vmul.f32 %v780_v4, %v1069_v7 }
 0x21c   : > { %544 = vst [vmem:[%s260_s13 + $0x20] sm:$0xff] %v536_v2 }
 0x21d   : > { %v782_v37 = vpop.eup %781  ;;  %545 = vst [vmem:[%s260_s13 + $0x28] sm:$0xff] %v537_v36 }
 0x21e   : > { %v538_v6 = vmul.f32 %v782_v37, %v1079_v12 }
 0x220   : > { %v784_v38 = vpop.eup %783  ;;  %546 = vst [vmem:[%s260_s13 + $0x30] sm:$0xff] %v538_v6 }
 0x221   : > { %v539_v3 = vmul.f32 %v784_v38, %v1071_v8 }
 0x223   : > { %547 = vst [vmem:[%s260_s13 + $0x38] sm:$0xff] %v539_v3 }
 0x224   : > { %828 = shalt.err (!%p825_p5)
}
 0x225   : > { %s829_s17 = scalar_lea.hbm %s1126_s10, 1024  ;;  %s833_s12 = scalar_lea.hbm %s1183_s5, 2048 }
 0x226   : > { %p830_p4 = scmp.ne.s32.totalorder %s1126_s10, %s829_s17  ;;  %p834_p12 = scmp.lt.u32.totalorder %s1126_s10, %s1183_s5 }
 0x227   : > { %p835_p1 = scmp.lt.u32.totalorder %s833_s12, %s829_s17  ;;  %p837_p8 = scmp.lt.u32.totalorder %s829_s17, %s1126_s10 }
 0x228   : > { %p831_p7 = pnand %p830_p4, %p1191_p9 }
 0x229   : > { %p836_p3 = por %p835_p1, %p834_p12 }
 0x22a   : > { %p832_p10 = pneg %p831_p7 }
 0x22b   : > { %p838_p11 = por %p837_p8, %p836_p3 }
 0x22d   : > { %p839_p0 = pnand %p838_p11, %p832_p10 }
 0x22f   : > { %842 = shalt.err (!%p839_p0)
}
 0x230   : > { %s905_s25 = smov 256   ;;  %s906_s27 = smov 16  }
 0x231   : > { %685 = dma.vmem_to_hbm [thread:$0]  (%p1191_p9), %s1128_s15, 1024, %s1126_s10, %s549_s11, %s905_s25, %s905_s25, %s906_s27  }
 0x232 PF: > { %s579_s21 = sand.u32 1, %s877_s18   ;;  %p1192_p6 = scmp.ne.s32.totalorder %s1188_s8, 0 }
 0x233   : > { %p1193_p13 = scmp.ge.s32.totalorder %s897_s23, 2  ;;  %s580_s30 = scalar_lea.sflag [#allocation4], %s579_s21 }
 0x235   : > { %p692_p2 = pnand %p1193_p13, %p1192_p6 }
 0x237   : > { %872 = dma.done.wait (!%p692_p2), %s580_s30, 1024  }
 0x238   : > { %874 = vsyncadd (!%p692_p2), %s580_s30, 4294966272  ;;  %s21_s23 = sadd.s32 1, %s897_s23   ;;  %s1194_s18 = smov %s881_s19 }
 0x239   : > { %p18_p5 = scmp.ge.s32.totalorder %s21_s23, 4   ;;  %s1195_s19 = smov %s885_s20 }
 0x23a   : > { %s1196_s20 = smov %s993_s7  ;;  %s1197_s21 = smov %s893_s22 }
 0x23b   : > { %s1198_s22 = smov %s1200_s26  ;;  %20 = sbr.rel (!%p18_p5) target bundleno = 6 (0x6), region = 85 }
 0x242   :  { %585 = vsyncpa [#allocation3], 1 }
 0x243   :  { %587 = vsyncpa [#allocation3 + $0x1], 1 }
 0x244   :  { %588 = vsyncpa [#allocation4], 1 }
 0x245   :  { %590 = vsyncpa [#allocation4 + $0x1], 1 }

</bundles_post_ra>
